<compile_context>
chip_gen: v7x
topology: tpu7x:2x2x1
jax: 0.10.0
libtpu: 0.0.40
codegen_flags: <defaults>
</compile_context>

<pallas_src>
import math
import functools

import jax
import jax.numpy as jnp
from jax.experimental import pallas as pl
from jax.experimental.pallas import tpu as pltpu


LANE = 128      # TPU lane width (last vreg dim)
SUBLANE = 8     # f32 sublane count (second-to-last vreg dim)


def _round_up(v, m):
    return (v + m - 1) // m * m


def _pad2d(a, rows, cols):
    r, c = a.shape
    return jnp.pad(a, ((0, rows - r), (0, cols - c)))


def gcn_kernel(x_ref, adj_ref, w1_ref, b1_ref, w23_ref, b23_ref, out_ref, *,
               nclass):
    x = x_ref[...]
    adj = adj_ref[...]

    # ---- gc1: relu(adj @ (x @ W1) + b1) ----
    s1 = jnp.dot(x, w1_ref[...], preferred_element_type=jnp.float32)
    h = jnp.dot(adj, s1, preferred_element_type=jnp.float32) + b1_ref[...]
    h = jnp.maximum(h, 0.0)

    # TODO(synk): dropout skipped (eval-mode identity); training-time dropout
    # would use pltpu.prng_seed / pltpu.prng_random_bits.

    # ---- gc2 + gc3 fused: one second adj pass over W23 = [W2 | W3] ----
    s23 = jnp.dot(h, w23_ref[...], preferred_element_type=jnp.float32)
    y = jnp.dot(adj, s23, preferred_element_type=jnp.float32) + b23_ref[...]

    n_rows, out_w = out_ref.shape
    col = jax.lax.broadcasted_iota(jnp.int32, (n_rows, out_w), 1)
    neg_inf = jnp.float32(-jnp.inf)

    def masked_log_softmax(z, mask):
        # Full-lane-width, numerically stable log-softmax restricted to `mask`
        # lanes (padded lanes contribute nothing; result is -inf there).
        zm = jnp.where(mask, z, neg_inf)
        m = jnp.max(zm, axis=1, keepdims=True)
        e = jnp.where(mask, jnp.exp(zm - m), 0.0)
        lse = jnp.log(jnp.sum(e, axis=1, keepdims=True))
        return zm - m - lse

    mask1 = col < nclass                                     # x1 lanes
    mask2 = jnp.logical_and(col >= nclass, col < nclass + 2)  # x2 lanes

    ls1 = masked_log_softmax(y, mask1)
    ls2 = masked_log_softmax(y, mask2)

    # softmax(x1)[:, -1] == exp(log_softmax(x1)[:, -1]); extract lane nclass-1
    # via a masked lane reduction (XLU) and re-place it at lane nclass+2.
    sm_last = jnp.sum(jnp.where(col == nclass - 1, jnp.exp(ls1), 0.0),
                      axis=1, keepdims=True)

    # Packed lane-dense slab: [ls1 | ls2 | sm_last | zeros]; single dense store.
    packed = jnp.where(mask1, ls1,
             jnp.where(mask2, ls2,
             jnp.where(col == nclass + 2, sm_last, 0.0)))
    out_ref[...] = packed


def gcn_forward(x, adj, params):
    w1, b1, w2, b2, w3, b3 = params
    N, nfeat = x.shape
    nhid = w1.shape[1]
    nclass = w2.shape[1]

    # Fuse gc2 / gc3 parameters: one second-stage GEMM pair, one adj pass.
    w23 = jnp.concatenate([w2, w3], axis=1)          # [nhid, nclass + 2]
    b23 = jnp.concatenate([b2, b3], axis=0)          # [nclass + 2]

    # Zero-pad everything to vreg/MXU-friendly shapes (exact math).
    n_pad = _round_up(N, SUBLANE)
    f_pad = _round_up(nfeat, LANE)
    h_pad = _round_up(nhid, LANE)
    out_w = _round_up(nclass + 3, LANE)              # ls1 | ls2 | sm_last | pad

    x_p = _pad2d(x, n_pad, f_pad)
    adj_p = _pad2d(adj, n_pad, n_pad)
    w1_p = _pad2d(w1, f_pad, h_pad)
    b1_p = _pad2d(b1.reshape(1, -1), 1, h_pad)
    w23_p = _pad2d(w23, h_pad, out_w)
    b23_p = _pad2d(b23.reshape(1, -1), 1, out_w)

    inputs = (x_p, adj_p, w1_p, b1_p, w23_p, b23_p)

    def full_block(shape):
        # Explicit whole-array 2-D block; no late-bound loop-variable capture.
        return pl.BlockSpec(shape, lambda: (0, 0))

    in_specs = [full_block(a.shape) for a in inputs]
    out_specs = full_block((n_pad, out_w))

    slab = pl.pallas_call(
        functools.partial(gcn_kernel, nclass=nclass),
        out_shape=jax.ShapeDtypeStruct((n_pad, out_w), jnp.float32),
        in_specs=in_specs,
        out_specs=out_specs,
        compiler_params=pltpu.CompilerParams(vmem_limit_bytes=64 << 20),
    )(*inputs)

    logsm1 = slab[:N, :nclass]
    logsm2 = slab[:N, nclass:nclass + 2]
    sm_last = slab[:N, nclass + 2]
    return logsm1, logsm2, sm_last


def init_gcn_params(key, nfeat, nhid, nclass):
    """Deterministic init mirroring GraphConvolution.reset_parameters."""
    ks = jax.random.split(key, 6)

    def gc_params(kw, kb, fin, fout):
        stdv = 1.0 / math.sqrt(fout)
        w = jax.random.uniform(kw, (fin, fout), jnp.float32, -stdv, stdv)
        b = jax.random.uniform(kb, (fout,), jnp.float32, -stdv, stdv)
        return w, b

    w1, b1 = gc_params(ks[0], ks[1], nfeat, nhid)
    w2, b2 = gc_params(ks[2], ks[3], nhid, nclass)
    w3, b3 = gc_params(ks[4], ks[5], nhid, 2)
    return (w1, b1, w2, b2, w3, b3)


if __name__ == "__main__":
    N, nfeat, nhid, nclass = 16, 8, 32, 4

    key = jax.random.PRNGKey(0)
    k_x, k_adj, k_p = jax.random.split(key, 3)

    x = jax.random.normal(k_x, (N, nfeat), jnp.float32)
    # Dense "sparse" adjacency with self-loops, row-normalized.
    a = (jax.random.uniform(k_adj, (N, N)) < 0.3).astype(jnp.float32)
    a = a + jnp.eye(N, dtype=jnp.float32)
    adj = a / jnp.sum(a, axis=1, keepdims=True)

    params = init_gcn_params(k_p, nfeat, nhid, nclass)

    logsm1, logsm2, sm_last = gcn_forward(x, adj, params)
    jax.block_until_ready((logsm1, logsm2, sm_last))

    # Pure-JAX reference check.
    w1, b1, w2, b2, w3, b3 = params
    h = jnp.maximum(adj @ (x @ w1) + b1, 0.0)
    x1 = adj @ (h @ w2) + b2
    x2 = adj @ (h @ w3) + b3
    ref1 = jax.nn.log_softmax(x1, axis=1)
    ref2 = jax.nn.log_softmax(x2, axis=1)
    ref3 = jax.nn.softmax(x1, axis=1)[:, -1]

    assert logsm1.shape == (N, nclass) and logsm2.shape == (N, 2) and sm_last.shape == (N,)
    assert jnp.allclose(logsm1, ref1, atol=1e-5)
    assert jnp.allclose(logsm2, ref2, atol=1e-5)
    assert jnp.allclose(sm_last, ref3, atol=1e-5)

    print("KERNEL_OK")
</pallas_src>

<mosaic_0001>
module attributes {stable_mosaic.version = 11 : i64} {
  func.func @gcn_kernel(%arg0: memref<16x128xf32, #tpu.memory_space<vmem>>, %arg1: memref<16x16xf32, #tpu.memory_space<vmem>>, %arg2: memref<128x128xf32, #tpu.memory_space<vmem>>, %arg3: memref<1x128xf32, #tpu.memory_space<vmem>>, %arg4: memref<128x128xf32, #tpu.memory_space<vmem>>, %arg5: memref<1x128xf32, #tpu.memory_space<vmem>>, %arg6: memref<16x128xf32, #tpu.memory_space<vmem>>) attributes {dimension_semantics = [], scalar_prefetch = 0 : i64, scratch_operands = 0 : i64, tpu.core_type = #tpu.core_type<tc>} {
    %c0 = arith.constant 0 : index
    %c0_0 = arith.constant 0 : index
    %0 = vector.load %arg0[%c0, %c0_0] : memref<16x128xf32, #tpu.memory_space<vmem>>, vector<16x128xf32>
    %c0_1 = arith.constant 0 : index
    %c0_2 = arith.constant 0 : index
    %1 = vector.load %arg1[%c0_1, %c0_2] : memref<16x16xf32, #tpu.memory_space<vmem>>, vector<16x16xf32>
    %c0_3 = arith.constant 0 : index
    %c0_4 = arith.constant 0 : index
    %2 = vector.load %arg2[%c0_3, %c0_4] : memref<128x128xf32, #tpu.memory_space<vmem>>, vector<128x128xf32>
    %cst = arith.constant dense<0.000000e+00> : vector<16x128xf32>
    %3 = tpu.matmul %0, %2, %cst {dimension_numbers = #tpu.dot_dimension_numbers<[1], [0], [0], [1], [0, 0, 1, 1], [], []>} : vector<16x128xf32>, vector<128x128xf32>, vector<16x128xf32> -> vector<16x128xf32>
    %cst_5 = arith.constant dense<0.000000e+00> : vector<16x128xf32>
    %4 = tpu.matmul %1, %3, %cst_5 {dimension_numbers = #tpu.dot_dimension_numbers<[1], [0], [0], [1], [0, 0, 1, 1], [], []>} : vector<16x16xf32>, vector<16x128xf32>, vector<16x128xf32> -> vector<16x128xf32>
    %c0_6 = arith.constant 0 : index
    %c0_7 = arith.constant 0 : index
    %5 = vector.load %arg3[%c0_6, %c0_7] : memref<1x128xf32, #tpu.memory_space<vmem>>, vector<1x128xf32>
    %6 = vector.broadcast %5 : vector<1x128xf32> to vector<16x128xf32>
    %7 = arith.addf %4, %6 : vector<16x128xf32>
    %cst_8 = arith.constant 0.000000e+00 : f32
    %8 = vector.broadcast %cst_8 : f32 to vector<16x128xf32>
    %9 = arith.maximumf %7, %8 : vector<16x128xf32>
    %c0_9 = arith.constant 0 : index
    %c0_10 = arith.constant 0 : index
    %10 = vector.load %arg4[%c0_9, %c0_10] : memref<128x128xf32, #tpu.memory_space<vmem>>, vector<128x128xf32>
    %cst_11 = arith.constant dense<0.000000e+00> : vector<16x128xf32>
    %11 = tpu.matmul %9, %10, %cst_11 {dimension_numbers = #tpu.dot_dimension_numbers<[1], [0], [0], [1], [0, 0, 1, 1], [], []>} : vector<16x128xf32>, vector<128x128xf32>, vector<16x128xf32> -> vector<16x128xf32>
    %cst_12 = arith.constant dense<0.000000e+00> : vector<16x128xf32>
    %12 = tpu.matmul %1, %11, %cst_12 {dimension_numbers = #tpu.dot_dimension_numbers<[1], [0], [0], [1], [0, 0, 1, 1], [], []>} : vector<16x16xf32>, vector<16x128xf32>, vector<16x128xf32> -> vector<16x128xf32>
    %c0_13 = arith.constant 0 : index
    %c0_14 = arith.constant 0 : index
    %13 = vector.load %arg5[%c0_13, %c0_14] : memref<1x128xf32, #tpu.memory_space<vmem>>, vector<1x128xf32>
    %14 = vector.broadcast %13 : vector<1x128xf32> to vector<16x128xf32>
    %15 = arith.addf %12, %14 : vector<16x128xf32>
    %16 = tpu.iota {dimensions = array<i32: 1>} : vector<16x128xi32>
    %c4_i32 = arith.constant 4 : i32
    %17 = vector.broadcast %c4_i32 : i32 to vector<16x128xi32>
    %18 = arith.cmpi slt, %16, %17 : vector<16x128xi32>
    %c4_i32_15 = arith.constant 4 : i32
    %19 = vector.broadcast %c4_i32_15 : i32 to vector<16x128xi32>
    %20 = arith.cmpi sge, %16, %19 : vector<16x128xi32>
    %c6_i32 = arith.constant 6 : i32
    %21 = vector.broadcast %c6_i32 : i32 to vector<16x128xi32>
    %22 = arith.cmpi slt, %16, %21 : vector<16x128xi32>
    %23 = arith.andi %20, %22 : vector<16x128xi1>
    %cst_16 = arith.constant 0xFF800000 : f32
    %24 = vector.broadcast %cst_16 : f32 to vector<16x128xf32>
    %25 = arith.select %18, %15, %24 : vector<16x128xi1>, vector<16x128xf32>
    %cst_17 = arith.constant dense<0xFF800000> : vector<16xf32>
    %26 = vector.multi_reduction <maximumf>, %25, %cst_17 [1] : vector<16x128xf32> to vector<16xf32>
    %27 = vector.shape_cast %26 : vector<16xf32> to vector<16x1xf32>
    %28 = vector.broadcast %27 : vector<16x1xf32> to vector<16x128xf32>
    %29 = arith.subf %25, %28 : vector<16x128xf32>
    %30 = math.exp %29 : vector<16x128xf32>
    %cst_18 = arith.constant 0.000000e+00 : f32
    %31 = vector.broadcast %cst_18 : f32 to vector<16x128xf32>
    %32 = arith.select %18, %30, %31 : vector<16x128xi1>, vector<16x128xf32>
    %cst_19 = arith.constant dense<0.000000e+00> : vector<16xf32>
    %33 = vector.multi_reduction <add>, %32, %cst_19 [1] : vector<16x128xf32> to vector<16xf32>
    %34 = vector.shape_cast %33 : vector<16xf32> to vector<16x1xf32>
    %35 = math.log %34 : vector<16x1xf32>
    %36 = vector.broadcast %27 : vector<16x1xf32> to vector<16x128xf32>
    %37 = arith.subf %25, %36 : vector<16x128xf32>
    %38 = vector.broadcast %35 : vector<16x1xf32> to vector<16x128xf32>
    %39 = arith.subf %37, %38 : vector<16x128xf32>
    %cst_20 = arith.constant 0xFF800000 : f32
    %40 = vector.broadcast %cst_20 : f32 to vector<16x128xf32>
    %41 = arith.select %23, %15, %40 : vector<16x128xi1>, vector<16x128xf32>
    %cst_21 = arith.constant dense<0xFF800000> : vector<16xf32>
    %42 = vector.multi_reduction <maximumf>, %41, %cst_21 [1] : vector<16x128xf32> to vector<16xf32>
    %43 = vector.shape_cast %42 : vector<16xf32> to vector<16x1xf32>
    %44 = vector.broadcast %43 : vector<16x1xf32> to vector<16x128xf32>
    %45 = arith.subf %41, %44 : vector<16x128xf32>
    %46 = math.exp %45 : vector<16x128xf32>
    %cst_22 = arith.constant 0.000000e+00 : f32
    %47 = vector.broadcast %cst_22 : f32 to vector<16x128xf32>
    %48 = arith.select %23, %46, %47 : vector<16x128xi1>, vector<16x128xf32>
    %cst_23 = arith.constant dense<0.000000e+00> : vector<16xf32>
    %49 = vector.multi_reduction <add>, %48, %cst_23 [1] : vector<16x128xf32> to vector<16xf32>
    %50 = vector.shape_cast %49 : vector<16xf32> to vector<16x1xf32>
    %51 = math.log %50 : vector<16x1xf32>
    %52 = vector.broadcast %43 : vector<16x1xf32> to vector<16x128xf32>
    %53 = arith.subf %41, %52 : vector<16x128xf32>
    %54 = vector.broadcast %51 : vector<16x1xf32> to vector<16x128xf32>
    %55 = arith.subf %53, %54 : vector<16x128xf32>
    %c3_i32 = arith.constant 3 : i32
    %56 = vector.broadcast %c3_i32 : i32 to vector<16x128xi32>
    %57 = arith.cmpi eq, %16, %56 : vector<16x128xi32>
    %58 = math.exp %39 : vector<16x128xf32>
    %cst_24 = arith.constant 0.000000e+00 : f32
    %59 = vector.broadcast %cst_24 : f32 to vector<16x128xf32>
    %60 = arith.select %57, %58, %59 : vector<16x128xi1>, vector<16x128xf32>
    %cst_25 = arith.constant dense<0.000000e+00> : vector<16xf32>
    %61 = vector.multi_reduction <add>, %60, %cst_25 [1] : vector<16x128xf32> to vector<16xf32>
    %62 = vector.shape_cast %61 : vector<16xf32> to vector<16x1xf32>
    %c6_i32_26 = arith.constant 6 : i32
    %63 = vector.broadcast %c6_i32_26 : i32 to vector<16x128xi32>
    %64 = arith.cmpi eq, %16, %63 : vector<16x128xi32>
    %cst_27 = arith.constant 0.000000e+00 : f32
    %65 = vector.shape_cast %62 : vector<16x1xf32> to vector<16x1xf32>
    %66 = vector.broadcast %65 : vector<16x1xf32> to vector<16x128xf32>
    %67 = vector.broadcast %cst_27 : f32 to vector<16x128xf32>
    %68 = arith.select %64, %66, %67 : vector<16x128xi1>, vector<16x128xf32>
    %69 = arith.select %23, %55, %68 : vector<16x128xi1>, vector<16x128xf32>
    %70 = arith.select %18, %39, %69 : vector<16x128xi1>, vector<16x128xf32>
    %c0_28 = arith.constant 0 : index
    %c0_29 = arith.constant 0 : index
    %71 = vector.load %arg6[%c0_28, %c0_29] : memref<16x128xf32, #tpu.memory_space<vmem>>, vector<16x128xf32>
    tpu.vector_store %arg6[%c0_28, %c0_29], %70 {strides = array<i32>} : memref<16x128xf32, #tpu.memory_space<vmem>>, vector<16x128xf32>,
    return
  }
}

</mosaic_0001>

<bundles_post_ra>
// kernel: tpu_custom_call.1
= control target key start
LH: loop header
LB: loop body
LE: loop exit
PB: predicated region body
PF: predicated region fallthrough
CT: control target
= control target key end

     0   :  { %11 = vsyncpa [#allocation3], 0  ;;  %s1155_s0 = inlined_call_operand.hbm [shape: f32[16,128], index: 0, kind: input, shape index: {}]   ;;  %s1156_s1 = inlined_call_operand.hbm [shape: f32[16,16], index: 1, kind: input, shape index: {}]   ;;  %s1157_s2 = inlined_call_operand.hbm [shape: f32[128,128], index: 2, kind: input, shape index: {}]   ;;  %s1158_s3 = inlined_call_operand.hbm [shape: f32[1,128], index: 3, kind: input, shape index: {}]   ;;  %s1159_s4 = inlined_call_operand.hbm [shape: f32[128,128], index: 4, kind: input, shape index: {}]   ;;  %s1160_s5 = inlined_call_operand.hbm [shape: f32[1,128], index: 5, kind: input, shape index: {}]   ;;  %s1161_s6 = inlined_call_operand.hbm [shape: f32[16,128], index: 6, kind: output, shape index: {}]  }
   0x1   :  { %12 = vsyncpa [#allocation6], 0 }
   0x2   :  { %13 = vsyncpa [#allocation9], 0 }
   0x3   :  { %14 = vsyncpa [#allocation12], 0 }
   0x4   :  { %15 = vsyncpa [#allocation4], 0  ;;  %s954_s21 = smov [#allocation5]   ;;  %s955_s23 = smov [#allocation8]  }
   0x5   :  { %s33_s22 = sshll.u32 %s954_s21, 4  ;;  %s58_s24 = sshll.u32 %s955_s23, 4  ;;  %s34_s22 = int_to_ptr.vmem [resolvable:$true] %s33_s22  ;;  %s998_s24 = int_to_ptr.vmem [resolvable:$true] %s58_s24 }
   0x6   :  { %s790_s27 = scalar_lea.hbm %s1156_s1, 256 }
   0x7   :  { %p791_p0 = scmp.ne.s32.totalorder %s1156_s1, %s790_s27  ;;  %p794_p1 = scmp.lt.u32.totalorder %s790_s27, %s1156_s1 }
   0x9   :  { %p796_p2 = pnand %p794_p1, %p791_p0 }
   0xb   :  { %799 = shalt.err (!%p796_p2)
}
   0xc   :  { %s800_s8 = scalar_lea.vmem %s34_s22, 256  ;;  %p805_p4 = scmp.lt.s32.totalorder %s34_s22, %s34_s22 }
   0xd   :  { %p801_p3 = scmp.ne.s32.totalorder %s34_s22, %s800_s8  ;;  %p806_p5 = scmp.lt.s32.totalorder %s800_s8, %s800_s8 }
   0xf   :  { %p807_p6 = por %p806_p5, %p805_p4 }
  0x11   :  { %p808_p7 = pnand %p807_p6, %p801_p3 }
  0x13   :  { %811 = shalt.err (!%p808_p7)
}
  0x14   :  { %s956_s9 = smov 128   ;;  %s957_s10 = smov 8  }
  0x15   :  { %39 = dma.hbm_to_vmem [thread:$0]  %s1156_s1, 256, %s34_s22, [#allocation6], %s956_s9, %s956_s9, %s957_s10  }
  0x16   :  { %s812_s15 = scalar_lea.hbm %s1158_s3, 16 }
  0x17   :  { %p813_p8 = scmp.ne.s32.totalorder %s1158_s3, %s812_s15  ;;  %p816_p9 = scmp.lt.u32.totalorder %s812_s15, %s1158_s3 }
  0x19   :  { %p818_p10 = pnand %p816_p9, %p813_p8 }
  0x1b   :  { %821 = shalt.err (!%p818_p10)
}
  0x1c   :  { %s822_s20 = scalar_lea.vmem %s998_s24, 16  ;;  %s826_s1 = scalar_lea.vmem %s998_s24, 32 }
  0x1d   :  { %p823_p11 = scmp.ne.s32.totalorder %s998_s24, %s822_s20  ;;  %p827_p12 = scmp.lt.s32.totalorder %s998_s24, %s998_s24 }
  0x1e   :  { %p828_p13 = scmp.lt.s32.totalorder %s826_s1, %s822_s20 }
  0x20   :  { %p829_p0 = por %p828_p13, %p827_p12 }
  0x22   :  { %p830_p1 = pnand %p829_p0, %p823_p11 }
  0x24   :  { %833 = shalt.err (!%p830_p1)
}
  0x25   :  { %61 = dma.hbm_to_vmem [thread:$0]  %s1158_s3, 16, %s998_s24, [#allocation9]  }
  0x26   :  { %s958_s23 = smov [#allocation2]   ;;  %s959_s26 = smov [#allocation7]  }
  0x27   :  { %s21_s25 = sshll.u32 %s958_s23, 4  ;;  %s45_s27 = sshll.u32 %s959_s26, 4  ;;  %s22_s25 = int_to_ptr.vmem [resolvable:$true] %s21_s25  ;;  %s1033_s27 = int_to_ptr.vmem [resolvable:$true] %s45_s27 }
  0x28   :  { %s834_s30 = scalar_lea.hbm %s1155_s0, 256 }
  0x29   :  { %p835_p2 = scmp.ne.s32.totalorder %s1155_s0, %s834_s30  ;;  %p838_p3 = scmp.lt.u32.totalorder %s834_s30, %s1155_s0 }
  0x2b   :  { %p840_p4 = pnand %p838_p3, %p835_p2 }
  0x2d   :  { %843 = shalt.err (!%p840_p4)
}
  0x2e   :  { %s844_s3 = scalar_lea.vmem %s22_s25, 256  ;;  %p849_p6 = scmp.lt.s32.totalorder %s22_s25, %s22_s25 }
  0x2f   :  { %p845_p5 = scmp.ne.s32.totalorder %s22_s25, %s844_s3  ;;  %p850_p7 = scmp.lt.s32.totalorder %s844_s3, %s844_s3 }
  0x31   :  { %p851_p8 = por %p850_p7, %p849_p6 }
  0x33   :  { %p852_p9 = pnand %p851_p8, %p845_p5 }
  0x35   :  { %855 = shalt.err (!%p852_p9)
}
  0x36   :  { %27 = dma.hbm_to_vmem [thread:$0]  %s1155_s0, 256, %s22_s25, [#allocation3], %s956_s9, %s956_s9, %s957_s10  }
  0x37   :  { %s856_s16 = scalar_lea.hbm %s1157_s2, 2048 }
  0x38   :  { %p857_p10 = scmp.ne.s32.totalorder %s1157_s2, %s856_s16  ;;  %p860_p11 = scmp.lt.u32.totalorder %s856_s16, %s1157_s2 }
  0x3a   :  { %p862_p12 = pnand %p860_p11, %p857_p10 }
  0x3c   :  { %865 = shalt.err (!%p862_p12)
}
  0x3d   :  { %s866_s1 = scalar_lea.vmem %s1033_s27, 2048  ;;  %p871_p0 = scmp.lt.s32.totalorder %s1033_s27, %s1033_s27 }
  0x3e   :  { %p867_p13 = scmp.ne.s32.totalorder %s1033_s27, %s866_s1  ;;  %p872_p1 = scmp.lt.s32.totalorder %s866_s1, %s866_s1 }
  0x40   :  { %p873_p2 = por %p872_p1, %p871_p0 }
  0x42   :  { %p874_p3 = pnand %p873_p2, %p867_p13 }
  0x44   :  { %877 = shalt.err (!%p874_p3)
}
  0x45   :  { %51 = dma.hbm_to_vmem [thread:$0]  %s1157_s2, 2048, %s1033_s27, [#allocation6], %s956_s9, %s956_s9, %s957_s10  }
  0x46   :  { %s960_s22 = smov [#allocation10]   ;;  %s961_s25 = smov [#allocation11]  }
  0x47   :  { %s67_s23 = sshll.u32 %s960_s22, 4  ;;  %s80_s26 = sshll.u32 %s961_s25, 4  ;;  %s68_s23 = int_to_ptr.vmem [resolvable:$true] %s67_s23  ;;  %s81_s26 = int_to_ptr.vmem [resolvable:$true] %s80_s26 }
  0x48   :  { %s878_s30 = scalar_lea.hbm %s1159_s4, 2048 }
  0x49   :  { %p879_p4 = scmp.ne.s32.totalorder %s1159_s4, %s878_s30  ;;  %p882_p5 = scmp.lt.u32.totalorder %s878_s30, %s1159_s4 }
  0x4b   :  { %p884_p6 = pnand %p882_p5, %p879_p4 }
  0x4d   :  { %887 = shalt.err (!%p884_p6)
}
  0x4e   :  { %s888_s2 = scalar_lea.vmem %s68_s23, 2048  ;;  %p893_p8 = scmp.lt.s32.totalorder %s68_s23, %s68_s23 }
  0x4f   :  { %p889_p7 = scmp.ne.s32.totalorder %s68_s23, %s888_s2  ;;  %p894_p9 = scmp.lt.s32.totalorder %s888_s2, %s888_s2 }
  0x51   :  { %p895_p10 = por %p894_p9, %p893_p8 }
  0x53   :  { %p896_p11 = pnand %p895_p10, %p889_p7 }
  0x55   :  { %899 = shalt.err (!%p896_p11)
}
  0x56   :  { %73 = dma.hbm_to_vmem [thread:$0]  %s1159_s4, 2048, %s68_s23, [#allocation9], %s956_s9, %s956_s9, %s957_s10  }
  0x57   :  { %s900_s14 = scalar_lea.hbm %s1160_s5, 16 }
  0x58   :  { %p901_p12 = scmp.ne.s32.totalorder %s1160_s5, %s900_s14  ;;  %p904_p13 = scmp.lt.u32.totalorder %s900_s14, %s1160_s5 }
  0x5a   :  { %p906_p0 = pnand %p904_p13, %p901_p12 }
  0x5c   :  { %909 = shalt.err (!%p906_p0)
}
  0x5d   :  { %s910_s19 = scalar_lea.vmem %s81_s26, 16  ;;  %s914_s20 = scalar_lea.vmem %s81_s26, 32 }
  0x5e   :  { %p911_p1 = scmp.ne.s32.totalorder %s81_s26, %s910_s19  ;;  %p915_p2 = scmp.lt.s32.totalorder %s81_s26, %s81_s26 }
  0x5f   :  { %p916_p3 = scmp.lt.s32.totalorder %s914_s20, %s910_s19 }
  0x61   :  { %p917_p4 = por %p916_p3, %p915_p2 }
  0x63   :  { %p918_p5 = pnand %p917_p4, %p911_p1 }
  0x65   :  { %921 = shalt.err (!%p918_p5)
}
  0x66   :  { %83 = dma.hbm_to_vmem [thread:$0]  %s1160_s5, 16, %s81_s26, [#allocation12]  }
  0x67   :  { %944 = dma.done.wait [#allocation3], 256  }
  0x68   :  { %945 = vsyncadd [#allocation3], 4294967040 }
  0x69   :  { %946 = dma.done.wait [#allocation6], 2304  }
  0x6a   :  { %947 = vsyncadd [#allocation6], 4294964992 }
  0x6b   :  { %948 = dma.done.wait [#allocation9], 2064  }
  0x6c   :  { %949 = vsyncadd [#allocation9], 4294965232 }
  0x6d   :  { %950 = dma.done.wait [#allocation12], 16  }
  0x6e   :  { %951 = vsyncadd [#allocation12], 4294967280  ;;  %v106_v0 = vld [vmem:[#allocation7] sm:$0xff]  ;;  %v107_v1 = vld [vmem:[#allocation7 + $0x8] sm:$0xff]  ;;  %vm204_vm0 = vcmask 130048   ;;  %s962_s5 = smov [#allocation13]  }
  0x6f   :  { %v108_v2 = vld [vmem:[#allocation7 + $0x10] sm:$0xff]  ;;  %v689_v3 = vpack.c.bf16 %v107_v1, %v106_v0  ;;  %v109_v4 = vld [vmem:[#allocation7 + $0x18] sm:$0xff]  ;;  %v110_v6 = vld [vmem:[#allocation7 + $0x20] sm:$0xff]  ;;  %v461_v1 = vlaneseq  ;;  %s540_s0 = sshll.u32 %s962_s5, 4  ;;  %s541_s0 = int_to_ptr.vmem [resolvable:$true] %s540_s0 }
  0x70   :  { %v693_v5 = vpack.c.bf16 %v109_v4, %v108_v2  ;;  %v111_v7 = vld [vmem:[#allocation7 + $0x28] sm:$0xff]  ;;  %v102_v9 = vld [vmem:[#allocation2] sm:$0xff]  ;;  %v112_v10 = vld [vmem:[#allocation7 + $0x30] sm:$0xff]  ;;  %s922_s21 = scalar_lea.vmem %s541_s0, 256  ;;  %p927_p7 = scmp.lt.s32.totalorder %s541_s0, %s541_s0 }
  0x71   :  { %690 = vmatprep.subr.bf16.mxu0 %v689_v3  ;;  %v697_v8 = vpack.c.bf16 %v111_v7, %v110_v6  ;;  %v113_v11 = vld [vmem:[#allocation7 + $0x38] sm:$0xff]  ;;  %637 = vmatprep.mubr.f32.mxu0 %v102_v9  ;;  %v114_v13 = vld [vmem:[#allocation7 + $0x40] sm:$0xff]  ;;  %v115_v14 = vld [vmem:[#allocation7 + $0x48] sm:$0xff]  ;;  %v1101_v2 = vand.u32 127, %v461_v1  ;;  %p923_p6 = scmp.ne.s32.totalorder %s541_s0, %s922_s21  ;;  %p928_p8 = scmp.lt.s32.totalorder %s922_s21, %s922_s21 }
  0x72   :  { %692 = vmatpush3.bf16.msra.mxu0 %v689_v3  ;;  %v701_v12 = vpack.c.bf16 %v113_v11, %v112_v10  ;;  %v705_v15 = vpack.c.bf16 %v115_v14, %v114_v13  ;;  %v116_v16 = vld [vmem:[#allocation7 + $0x50] sm:$0xff]  ;;  %v117_v17 = vld [vmem:[#allocation7 + $0x58] sm:$0xff]  ;;  %v118_v19 = vld [vmem:[#allocation7 + $0x60] sm:$0xff] }
  0x73   :  { %694 = vmatprep.subr.bf16.mxu0 %v693_v5  ;;  %v709_v18 = vpack.c.bf16 %v117_v17, %v116_v16  ;;  %v119_v20 = vld [vmem:[#allocation7 + $0x68] sm:$0xff]  ;;  %v120_v22 = vld [vmem:[#allocation7 + $0x70] sm:$0xff]  ;;  %v121_v23 = vld [vmem:[#allocation7 + $0x78] sm:$0xff]  ;;  %vm464_vm1 = vcmp.ge.s32.totalorder %v1101_v2, 4  ;;  %vm465_vm2 = vcmp.lt.s32.totalorder %v1101_v2, 6  ;;  %vm463_vm4 = vcmp.lt.s32.totalorder %v1101_v2, 4  ;;  %p929_p9 = por %p928_p8, %p927_p7 }
  0x74   :  { %v713_v21 = vpack.c.bf16 %v119_v20, %v118_v19  ;;  %v717_v24 = vpack.c.bf16 %v121_v23, %v120_v22  ;;  %v103_v25 = vld [vmem:[#allocation2 + $0x8] sm:$0xff]  ;;  %v104_v26 = vld [vmem:[#allocation5] sm:$0xff]  ;;  %v291_v34 = vld [vmem:[#allocation10 + $0x18] sm:$0xff]  ;;  %vm515_vm5 = vcmp.eq.s32.totalorder %v1101_v2, 3  ;;  %vm526_vm6 = vcmp.eq.s32.totalorder %v1101_v2, 6 }
  0x75   :  { %644 = vmatprep.mubr.msk.f32.mxu1 %vm204_vm0, %v104_v26  ;;  %v288_v27 = vld [vmem:[#allocation10] sm:$0xff]  ;;  %v289_v28 = vld [vmem:[#allocation10 + $0x8] sm:$0xff]  ;;  %v290_v33 = vld [vmem:[#allocation10 + $0x10] sm:$0xff]  ;;  %p930_p10 = pnand %p929_p9, %p923_p6 }
  0x76   :  { %696 = vmatpush3.bf16.msra.mxu0 %v693_v5  ;;  %v725_v32 = vpack.c.bf16 %v289_v28, %v288_v27  ;;  %v105_v35 = vld [vmem:[#allocation5 + $0x8] sm:$0xff]  ;;  %v729_v36 = vpack.c.bf16 %v291_v34, %v290_v33  ;;  %v292_v37 = vld [vmem:[#allocation10 + $0x20] sm:$0xff]  ;;  %v293_v38 = vld [vmem:[#allocation10 + $0x28] sm:$0xff] }
  0x77   :  { %698 = vmatprep.subr.bf16.mxu0 %v697_v8  ;;  %v733_v39 = vpack.c.bf16 %v293_v38, %v292_v37  ;;  %v294_v40 = vld [vmem:[#allocation10 + $0x30] sm:$0xff]  ;;  %v295_v41 = vld [vmem:[#allocation10 + $0x38] sm:$0xff]  ;;  %v296_v43 = vld [vmem:[#allocation10 + $0x40] sm:$0xff] }
  0x78   :  { %v737_v42 = vpack.c.bf16 %v295_v41, %v294_v40  ;;  %v297_v44 = vld [vmem:[#allocation10 + $0x48] sm:$0xff]  ;;  %v298_v46 = vld [vmem:[#allocation10 + $0x50] sm:$0xff]  ;;  %v299_v47 = vld [vmem:[#allocation10 + $0x58] sm:$0xff] }
  0x79   :  { %v741_v45 = vpack.c.bf16 %v297_v44, %v296_v43  ;;  %v745_v48 = vpack.c.bf16 %v299_v47, %v298_v46  ;;  %v300_v49 = vld [vmem:[#allocation10 + $0x60] sm:$0xff]  ;;  %v301_v50 = vld [vmem:[#allocation10 + $0x68] sm:$0xff]  ;;  %v302_v52 = vld [vmem:[#allocation10 + $0x70] sm:$0xff] }
  0x7a   :  { %700 = vmatpush3.bf16.msra.mxu0 %v697_v8  ;;  %v749_v51 = vpack.c.bf16 %v301_v50, %v300_v49  ;;  %v303_v53 = vld [vmem:[#allocation10 + $0x78] sm:$0xff]  ;;  %v558_v3 = vld [vmem:[#allocation11] ss:$0 sm:$0xff]  ;;  %vm1105_vm3 = vmand %vm464_vm1, %vm465_vm2 }
  0x7b   :  { %702 = vmatprep.subr.bf16.mxu0 %v701_v12  ;;  %v753_v54 = vpack.c.bf16 %v303_v53, %v302_v52  ;;  %v555_v55 = vld [vmem:[#allocation8] ss:$0 sm:$0xff] }
  0x7e   :  { %704 = vmatpush3.bf16.msra.mxu0 %v701_v12 }
  0x7f   :  { %706 = vmatprep.subr.bf16.mxu0 %v705_v15 }
  0x82   :  { %708 = vmatpush3.bf16.msra.mxu0 %v705_v15 }
  0x83   :  { %710 = vmatprep.subr.bf16.mxu0 %v709_v18 }
  0x86   :  { %712 = vmatpush3.bf16.msra.mxu0 %v709_v18 }
  0x87   :  { %714 = vmatprep.subr.bf16.mxu0 %v713_v21 }
  0x8a   :  { %716 = vmatpush3.bf16.msra.mxu0 %v713_v21 }
  0x8b   :  { %718 = vmatprep.subr.bf16.mxu0 %v717_v24 }
  0x8e   :  { %720 = vmatpush3.bf16.msra.mxu0 %v717_v24 }
  0x91   :  { %638 = vmatmul.mubr.f32.vlgmr.msra.gmra.mrb[0].mxu0 %v103_v25 }
  0x92   :  { %686 = vmatprep.mubr.msk.f32.mxu0 %vm204_vm0, %v104_v26 }
 0x164   :  { %v639_v29 = vpop.f32.mrb[0].mxu0 }
 0x165   :  { %v188_v30 = vpop.f32.mrb[1].mxu0 }
 0x166   :  { %v721_v31 = vpack.c.bf16 %v639_v29, %v188_v30 }
 0x168   :  { %722 = vmatprep.subr.bf16.mxu1 %v721_v31 }
 0x169   :  { %724 = vmatpush3.bf16.msra.mxu1 %v721_v31 }
 0x16a   :  { %726 = vmatprep.subr.bf16.mxu1 %v725_v32 }
 0x16c   :  { %645 = vmatmul.mubr.msk.f32.vlgmr.msra.gmra.mrb[0].mxu1 %vm204_vm0, %v105_v35 }
 0x16d   :  { %728 = vmatpush3.bf16.msra.mxu1 %v725_v32 }
 0x16e   :  { %730 = vmatprep.subr.bf16.mxu1 %v729_v36 }
 0x171   :  { %732 = vmatpush3.bf16.msra.mxu1 %v729_v36 }
 0x172   :  { %734 = vmatprep.subr.bf16.mxu1 %v733_v39 }
 0x175   :  { %736 = vmatpush3.bf16.msra.mxu1 %v733_v39 }
 0x176   :  { %738 = vmatprep.subr.bf16.mxu1 %v737_v42 }
 0x179   :  { %740 = vmatpush3.bf16.msra.mxu1 %v737_v42 }
 0x17a   :  { %742 = vmatprep.subr.bf16.mxu1 %v741_v45 }
 0x17d   :  { %744 = vmatpush3.bf16.msra.mxu1 %v741_v45 }
 0x17e   :  { %746 = vmatprep.subr.bf16.mxu1 %v745_v48 }
 0x181   :  { %748 = vmatpush3.bf16.msra.mxu1 %v745_v48 }
 0x182   :  { %750 = vmatprep.subr.bf16.mxu1 %v749_v51 }
 0x185   :  { %752 = vmatpush3.bf16.msra.mxu1 %v749_v51 }
 0x186   :  { %754 = vmatprep.subr.bf16.mxu1 %v753_v54 }
 0x189   :  { %756 = vmatpush3.bf16.msra.mxu1 %v753_v54 }
 0x23f   :  { %v646_v56 = vpop.f32.mrb[0].mxu1 }
 0x240   :  { %v283_v57 = vadd.f32 %v646_v56, %v555_v55  ;;  %v277_v58 = vpop.f32.mrb[1].mxu1 }
 0x241   :  { %v278_v59 = vadd.f32 %v555_v55, %v277_v58 }
 0x242   :  { %v287_v61 = vmax.f32 %v283_v57, 0.0 }
 0x243   :  { %v286_v60 = vmax.f32 %v278_v59, 0.0 }
 0x245   :  { %679 = vmatprep.mubr.f32.mxu1 %v286_v60 }
 0x246   :  { %680 = vmatmul.mubr.f32.vlgmr.msra.gmra.mrb[2].mxu1 %v287_v61 }
 0x319   :  { %v681_v62 = vpop.f32.mrb[2].mxu1 }
 0x31a   :  { %v370_v63 = vpop.f32.mrb[3].mxu1 }
 0x31b   :  { %v757_v0 = vpack.c.bf16 %v681_v62, %v370_v63 }
 0x31d   :  { %758 = vmatprep.subr.bf16.mxu0 %v757_v0 }
 0x31e   :  { %760 = vmatpush3.bf16.msra.mxu0 %v757_v0 }
 0x321   :  { %687 = vmatmul.mubr.msk.f32.vlgmr.msra.gmra.mrb[2].mxu0 %vm204_vm0, %v105_v35 }
 0x3f4   :  { %v688_v4 = vpop.f32.mrb[2].mxu0 }
 0x3f5   :  { %v458_v6 = vadd.f32 %v688_v4, %v558_v3  ;;  %v452_v7 = vpop.f32.mrb[3].mxu0 }
 0x3f6   :  { %v453_v8 = vadd.f32 %v558_v3, %v452_v7 }
 0x3f7   :  { %v492_v9 = vsel %vm1105_vm3, %v458_v6, -inf  ;;  %v468_v12 = vsel %vm463_vm4, %v458_v6, -inf }
 0x3f8   :  { %495 = vmax.xlane.f32.xlu1 %v492_v9  ;;  %v467_v10 = vsel %vm463_vm4, %v453_v8, -inf  ;;  %v491_v11 = vsel %vm1105_vm3, %v453_v8, -inf }
 0x3f9   :  { %469 = vmax.xlane.f32.xlu0 %v467_v10 }
 0x3fc   :  { %493 = vmax.xlane.f32.xlu1 %v491_v11 }
 0x3fd   :  { %471 = vmax.xlane.f32.xlu0 %v468_v12 }
 0x485   :  { %v496_v13 = vpop.xlane.xlu1 %495 }
 0x486   :  { %v470_v14 = vpop.xlane.xlu0 %469  ;;  %v1118_v16 = vsub.f32 %v492_v9, %v496_v13 }
 0x487   :  { %v473_v15 = vsub.f32 %v467_v10, %v470_v14 }
 0x488   :  { %v501_v23 = vmul.f32 1.442695, %v1118_v16 }
 0x489   :  { %v475_v17 = vmul.f32 1.442695, %v473_v15  ;;  %v494_v18 = vpop.xlane.xlu1 %493 }
 0x48a   :  { %v497_v19 = vsub.f32 %v491_v11, %v494_v18  ;;  %v472_v20 = vpop.xlane.xlu0 %471 }
 0x48b   :  { %770 = vpow2.f32 %v475_v17  ;;  %v474_v21 = vsub.f32 %v468_v12, %v472_v20 }
 0x48c   :  { %v499_v22 = vmul.f32 1.442695, %v497_v19 }
 0x48d   :  { %v477_v24 = vmul.f32 1.442695, %v474_v21 }
 0x48e   :  { %772 = vpow2.f32 %v499_v22 }
 0x48f   :  { %774 = vpow2.f32 %v477_v24 }
 0x490   :  { %776 = vpow2.f32 %v501_v23 }
 0x495   :  { %v771_v25 = vpop.eup %770 }
 0x496   :  { %v479_v26 = vsel %vm463_vm4, %v771_v25, 0.0 }
 0x497   :  { %481 = vadd.xlane.f32.xlu0 %v479_v26 }
 0x498   :  { %v773_v27 = vpop.eup %772 }
 0x499   :  { %v775_v28 = vpop.eup %774  ;;  %v503_v29 = vsel %vm1105_vm3, %v773_v27, 0.0 }
 0x49a   :  { %v480_v30 = vsel %vm463_vm4, %v775_v28, 0.0  ;;  %v777_v31 = vpop.eup %776 }
 0x49b   :  { %505 = vadd.xlane.f32.xlu0 %v503_v29  ;;  %483 = vadd.xlane.f32.xlu1 %v480_v30  ;;  %v504_v32 = vsel %vm1105_vm3, %v777_v31, 0.0 }
 0x49f   :  { %507 = vadd.xlane.f32.xlu1 %v504_v32 }
 0x524   :  { %v482_v33 = vpop.xlane.xlu0 %481 }
 0x525   :  { %778 = vlog2.f32 %v482_v33 }
 0x528   :  { %v484_v34 = vpop.xlane.xlu1 %483  ;;  %v506_v47 = vpop.xlane.xlu0 %505 }
 0x529   :  { %780 = vlog2.f32 %v484_v34 }
 0x52c   :  { %v508_v48 = vpop.xlane.xlu1 %507 }
 0x52f   :  { %v779_v35 = vpop.eup %778 }
 0x530   :  { %v486_v36 = vmul.f32 0.6931472, %v779_v35 }
 0x532   :  { %v489_v37 = vsub.f32 %v473_v15, %v486_v36 }
 0x533   :  { %v781_v38 = vpop.eup %780 }
 0x534   :  { %v516_v39 = vmul.f32 1.442695, %v489_v37  ;;  %v488_v40 = vmul.f32 0.6931472, %v781_v38 }
 0x536   :  { %782 = vpow2.f32 %v516_v39  ;;  %v490_v41 = vsub.f32 %v474_v21, %v488_v40 }
 0x538   :  { %v518_v42 = vmul.f32 1.442695, %v490_v41 }
 0x53a   :  { %784 = vpow2.f32 %v518_v42 }
 0x53b   :  { %786 = vlog2.f32 %v506_v47 }
 0x53c   :  { %788 = vlog2.f32 %v508_v48 }
 0x540   :  { %v783_v43 = vpop.eup %782 }
 0x541   :  { %v520_v44 = vsel %vm515_vm5, %v783_v43, 0.0 }
 0x542   :  { %522 = vadd.xlane.f32.xlu0 %v520_v44 }
 0x544   :  { %v785_v45 = vpop.eup %784 }
 0x545   :  { %v521_v46 = vsel %vm515_vm5, %v785_v45, 0.0  ;;  %v787_v49 = vpop.eup %786 }
 0x546   :  { %524 = vadd.xlane.f32.xlu1 %v521_v46  ;;  %v510_v50 = vmul.f32 0.6931472, %v787_v49  ;;  %v789_v51 = vpop.eup %788 }
 0x547   :  { %v512_v53 = vmul.f32 0.6931472, %v789_v51 }
 0x548   :  { %v513_v52 = vsub.f32 %v497_v19, %v510_v50 }
 0x549   :  { %v514_v58 = vsub.f32 %v1118_v16, %v512_v53 }
 0x5cf   :  { %v523_v54 = vpop.xlane.xlu0 %522 }
 0x5d0   :  { %v527_v55 = vsel %vm526_vm6, %v523_v54, 0.0 }
 0x5d1   :  { %v529_v56 = vsel %vm1105_vm3, %v513_v52, %v527_v55 }
 0x5d2   :  { %v531_v57 = vsel %vm463_vm4, %v489_v37, %v529_v56 }
 0x5d3   :  { %v525_v59 = vpop.xlane.xlu1 %524  ;;  %533 = vst [vmem:[#allocation13] sm:$0xff] %v531_v57 }
 0x5d4   :  { %v528_v60 = vsel %vm526_vm6, %v525_v59, 0.0 }
 0x5d5   :  { %v530_v61 = vsel %vm1105_vm3, %v514_v58, %v528_v60 }
 0x5d6   :  { %v532_v62 = vsel %vm463_vm4, %v490_v41, %v530_v61 }
 0x5d7   :  { %534 = vst [vmem:[#allocation13 + $0x8] sm:$0xff] %v532_v62 }
 0x5d8   :  { %933 = shalt.err (!%p930_p10)
}
 0x5d9   :  { %s934_s25 = scalar_lea.hbm %s1161_s6, 256 }
 0x5da   :  { %p935_p11 = scmp.ne.s32.totalorder %s1161_s6, %s934_s25  ;;  %p938_p12 = scmp.lt.u32.totalorder %s934_s25, %s1161_s6 }
 0x5dc   :  { %p940_p13 = pnand %p938_p12, %p935_p11 }
 0x5de   :  { %943 = shalt.err (!%p940_p13)
}
 0x5df   :  { %546 = dma.vmem_to_hbm [thread:$0]  %s541_s0, 256, %s1161_s6, [#allocation4], %s956_s9, %s956_s9, %s957_s10  }
 0x5e0   :  { %952 = dma.done.wait [#allocation4], 256  }
 0x5e1   :  { %953 = vsyncadd [#allocation4], 4294967040 }
 0x5e2   :  { %550 = vsyncpa [#allocation3], 1 }
 0x5e3   :  { %551 = vsyncpa [#allocation6], 1 }
 0x5e4   :  { %552 = vsyncpa [#allocation9], 1 }
 0x5e5   :  { %553 = vsyncpa [#allocation12], 1 }
 0x5e6   :  { %554 = vsyncpa [#allocation4], 1 }

</bundles_post_ra>
